<compile_context>
chip_gen: v7x
topology: tpu7x:2x2x1
jax: 0.10.0
libtpu: 0.0.40
codegen_flags: <defaults>
</compile_context>

<pallas_src>
import functools
import math

import jax
import jax.numpy as jnp
from jax.experimental import pallas as pl
from jax.experimental.pallas import tpu as pltpu


def _sdpa_kernel(q_ref, k_ref, v_ref, out_ref, attn_ref, log_attn_ref, *,
                 inv_temperature):
    # Block shapes: q (BT, TQ, D), k (BT, Lk, D), v (BT, Lk, Dv),
    #               out (BT, TQ, Dv), attn/log_attn (BT, TQ, Lk).

    # Fold the temperature scale into q: O(TQ*D) VPU work instead of O(TQ*Lk).
    q = q_ref[...] * jnp.asarray(inv_temperature, dtype=q_ref.dtype)
    k = k_ref[...]
    v = v_ref[...]

    # scores = q @ k^T, batched, contracting the shared D axis directly
    # (no explicit .T -> no XLU relayout of the K tile before the MXU push).
    scores = jnp.einsum("bqd,bkd->bqk", q, k,
                        preferred_element_type=jnp.float32)

    # Numerically stable softmax / log_softmax along the last axis (torch dim=2).
    m = jnp.max(scores, axis=-1, keepdims=True)
    shifted = scores - m
    e = jnp.exp(shifted)
    denom = jnp.sum(e, axis=-1, keepdims=True)

    # EUP vrcp seed + one Newton refinement: uses the otherwise-idle EUP slot
    # for the seed while keeping ~1 ulp accuracy (needed for 1e-5 tolerance).
    r = pl.reciprocal(denom, approx=True)
    r = r * (2.0 - denom * r)

    attn = e * r
    log_attn = shifted - jnp.log(denom)

    # TODO(synk): nn.Dropout(attn_dropout) is identity in eval mode; training-
    # mode dropout (pltpu.prng_seed / prng_random_bits) intentionally omitted.

    # output = attn @ v   (MXU, batched)
    out = jnp.einsum("bqk,bkd->bqd", attn.astype(v.dtype), v,
                     preferred_element_type=jnp.float32)

    out_ref[...] = out.astype(out_ref.dtype)
    attn_ref[...] = attn.astype(attn_ref.dtype)
    log_attn_ref[...] = log_attn.astype(log_attn_ref.dtype)


def _choose_tiles(B, Lq, Lk, D, Dv, itemsize):
    """Pick (BT, TQ): batch elements per step and Lq rows per step.

    Per-step footprint (double-buffered I/O tiles + live f32 intermediates)
    is kept under ~20 MiB, which is conservative for v7x (64 MiB physical
    VMEM) and leaves ample headroom on v5e/v6e (128 MiB)."""
    budget = 20 << 20

    def footprint(bt, tq):
        in_bytes = bt * (tq * D + Lk * D + Lk * Dv) * itemsize
        out_bytes = bt * (tq * Dv + 2 * tq * Lk) * itemsize
        live_f32 = bt * tq * Lk * 4 * 3          # scores / e / attn intermediates
        return 2 * (in_bytes + out_bytes) + live_f32   # x2 for double-buffering

    # Prefer packing batches (amortizes per-step overhead for small shapes),
    # then the largest Lq row-tile that fits.  Candidates must divide evenly
    # (keeps every block full -> no partial tiles) and be multiples of 8
    # (sublane constraint) unless they equal the full dim.
    bt_cands = [c for c in (16, 8, 4, 2, 1) if c <= B and B % c == 0] or [1]
    tq_cands = [c for c in (Lq, 1024, 512, 256, 128, 64, 32, 16, 8)
                if c <= Lq and Lq % c == 0] or [Lq]

    for bt in bt_cands:
        for tq in tq_cands:
            if footprint(bt, tq) <= budget:
                return bt, tq
    return 1, tq_cands[-1]


def scaled_dot_product_attention(q, k, v, temperature):
    """Pallas equivalent of ScaledDotProductAttention.forward (eval mode)."""
    B, Lq, D = q.shape
    Bk, Lk, Dk = k.shape
    Bv, Lkv, Dv = v.shape
    assert B == Bk == Bv and D == Dk and Lk == Lkv

    BT, TQ = _choose_tiles(B, Lq, Lk, D, Dv, q.dtype.itemsize)
    grid = (B // BT, Lq // TQ)

    kernel = functools.partial(
        _sdpa_kernel, inv_temperature=1.0 / float(temperature))

    out_shapes = (
        jax.ShapeDtypeStruct((B, Lq, Dv), q.dtype),   # output
        jax.ShapeDtypeStruct((B, Lq, Lk), q.dtype),   # attn
        jax.ShapeDtypeStruct((B, Lq, Lk), q.dtype),   # log_attn
    )

    # Raise the scoped VMEM limit above the 16/32 MiB default, but stay well
    # below physical capacity (re-derived per chip generation).
    try:
        vmem_cap = int(pltpu.get_tpu_info().vmem_capacity_bytes)
    except Exception:
        vmem_cap = 64 << 20   # v7x-safe fallback
    vmem_limit = min(vmem_cap * 3 // 4, 100 << 20)

    return pl.pallas_call(
        kernel,
        out_shape=out_shapes,
        grid_spec=pltpu.PrefetchScalarGridSpec(
            num_scalar_prefetch=0,
            grid=grid,
            in_specs=[
                pl.BlockSpec((BT, TQ, D), lambda b, i: (b, i, 0)),
                pl.BlockSpec((BT, Lk, D), lambda b, i: (b, 0, 0)),
                pl.BlockSpec((BT, Lk, Dv), lambda b, i: (b, 0, 0)),
            ],
            out_specs=[
                pl.BlockSpec((BT, TQ, Dv), lambda b, i: (b, i, 0)),
                pl.BlockSpec((BT, TQ, Lk), lambda b, i: (b, i, 0)),
                pl.BlockSpec((BT, TQ, Lk), lambda b, i: (b, i, 0)),
            ],
        ),
        compiler_params=pltpu.CompilerParams(
            dimension_semantics=("parallel", "parallel"),
            vmem_limit_bytes=vmem_limit),
    )(q, k, v)


def _reference(q, k, v, temperature):
    attn = jnp.einsum("bqd,bkd->bqk", q, k) / temperature
    log_attn = jax.nn.log_softmax(attn, axis=2)
    attn = jax.nn.softmax(attn, axis=2)
    out = jnp.einsum("bqk,bkd->bqd", attn, v)
    return out, attn, log_attn


if __name__ == "__main__":
    key = jax.random.PRNGKey(0)
    kq, kk, kv = jax.random.split(key, 3)

    B, Lq, Lk, D, Dv = 2, 8, 8, 32, 32
    temperature = math.sqrt(D)

    q = jax.random.normal(kq, (B, Lq, D), dtype=jnp.float32)
    k = jax.random.normal(kk, (B, Lk, D), dtype=jnp.float32)
    v = jax.random.normal(kv, (B, Lk, Dv), dtype=jnp.float32)

    out, attn, log_attn = scaled_dot_product_attention(q, k, v, temperature)
    jax.block_until_ready((out, attn, log_attn))

    # correctness check against pure-JAX reference
    ref_out, ref_attn, ref_log_attn = _reference(q, k, v, temperature)
    assert jnp.allclose(out, ref_out, atol=1e-5, rtol=1e-5)
    assert jnp.allclose(attn, ref_attn, atol=1e-5, rtol=1e-5)
    assert jnp.allclose(log_attn, ref_log_attn, atol=1e-5, rtol=1e-5)

    print("KERNEL_OK")
</pallas_src>

<mosaic_0001>
module attributes {stable_mosaic.version = 11 : i64} {
  func.func @_sdpa_kernel(%arg0: i32, %arg1: i32, %arg2: memref<2x8x32xf32, #tpu.memory_space<vmem>>, %arg3: memref<2x8x32xf32, #tpu.memory_space<vmem>>, %arg4: memref<2x8x32xf32, #tpu.memory_space<vmem>>, %arg5: memref<2x8x32xf32, #tpu.memory_space<vmem>>, %arg6: memref<2x8x8xf32, #tpu.memory_space<vmem>>, %arg7: memref<2x8x8xf32, #tpu.memory_space<vmem>>) attributes {dimension_semantics = [#tpu.dimension_semantics<parallel>, #tpu.dimension_semantics<parallel>], iteration_bounds = array<i64: 1, 1>, scalar_prefetch = 0 : i64, scratch_operands = 0 : i64, tpu.core_type = #tpu.core_type<tc>, window_params = [{transform_indices = @transform_0, window_bounds = array<i64: 2, 8, 32>}, {transform_indices = @transform_1, window_bounds = array<i64: 2, 8, 32>}, {transform_indices = @transform_2, window_bounds = array<i64: 2, 8, 32>}, {transform_indices = @transform_3, window_bounds = array<i64: 2, 8, 32>}, {transform_indices = @transform_4, window_bounds = array<i64: 2, 8, 8>}, {transform_indices = @transform_5, window_bounds = array<i64: 2, 8, 8>}]} {
    %c0 = arith.constant 0 : index
    %c0_0 = arith.constant 0 : index
    %c0_1 = arith.constant 0 : index
    %0 = vector.load %arg2[%c0, %c0_0, %c0_1] : memref<2x8x32xf32, #tpu.memory_space<vmem>>, vector<2x8x32xf32>
    %cst = arith.constant 0.176776692 : f32
    %1 = vector.broadcast %cst : f32 to vector<2x8x32xf32>
    %2 = arith.mulf %0, %1 : vector<2x8x32xf32>
    %c0_2 = arith.constant 0 : index
    %c0_3 = arith.constant 0 : index
    %c0_4 = arith.constant 0 : index
    %3 = vector.load %arg3[%c0_2, %c0_3, %c0_4] : memref<2x8x32xf32, #tpu.memory_space<vmem>>, vector<2x8x32xf32>
    %c0_5 = arith.constant 0 : index
    %c0_6 = arith.constant 0 : index
    %c0_7 = arith.constant 0 : index
    %4 = vector.load %arg4[%c0_5, %c0_6, %c0_7] : memref<2x8x32xf32, #tpu.memory_space<vmem>>, vector<2x8x32xf32>
    "tpu.trace_start"() <{level = 10 : i32, message = "bqd,bkd->bqk"}> : () -> ()
    %cst_8 = arith.constant dense<0.000000e+00> : vector<2x8x8xf32>
    %5 = tpu.matmul %2, %3, %cst_8 {dimension_numbers = #tpu.dot_dimension_numbers<[2], [2], [1], [1], [0, 0, 0, 1, 1, 1], [0], [0]>} : vector<2x8x32xf32>, vector<2x8x32xf32>, vector<2x8x8xf32> -> vector<2x8x8xf32>
    "tpu.trace_stop"() : () -> ()
    %cst_9 = arith.constant dense<0xFF800000> : vector<2x8xf32>
    %6 = vector.multi_reduction <maximumf>, %5, %cst_9 [2] : vector<2x8x8xf32> to vector<2x8xf32>
    %7 = vector.shape_cast %6 : vector<2x8xf32> to vector<2x8x1xf32>
    %8 = vector.broadcast %7 : vector<2x8x1xf32> to vector<2x8x8xf32>
    %9 = arith.subf %5, %8 : vector<2x8x8xf32>
    %10 = math.exp %9 : vector<2x8x8xf32>
    %cst_10 = arith.constant dense<0.000000e+00> : vector<2x8xf32>
    %11 = vector.multi_reduction <add>, %10, %cst_10 [2] : vector<2x8x8xf32> to vector<2x8xf32>
    %12 = vector.shape_cast %11 : vector<2x8xf32> to vector<2x8x1xf32>
    %13 = tpu.reciprocal %12 {approx = true} : vector<2x8x1xf32> -> vector<2x8x1xf32>
    %14 = arith.mulf %12, %13 : vector<2x8x1xf32>
    %cst_11 = arith.constant 2.000000e+00 : f32
    %15 = vector.broadcast %cst_11 : f32 to vector<2x8x1xf32>
    %16 = arith.subf %15, %14 : vector<2x8x1xf32>
    %17 = arith.mulf %13, %16 : vector<2x8x1xf32>
    %18 = vector.broadcast %17 : vector<2x8x1xf32> to vector<2x8x8xf32>
    %19 = arith.mulf %10, %18 : vector<2x8x8xf32>
    %20 = math.log %12 : vector<2x8x1xf32>
    %21 = vector.broadcast %20 : vector<2x8x1xf32> to vector<2x8x8xf32>
    %22 = arith.subf %9, %21 : vector<2x8x8xf32>
    "tpu.trace_start"() <{level = 10 : i32, message = "bqk,bkd->bqd"}> : () -> ()
    %cst_12 = arith.constant dense<0.000000e+00> : vector<2x8x32xf32>
    %23 = tpu.matmul %19, %4, %cst_12 {dimension_numbers = #tpu.dot_dimension_numbers<[2], [1], [1], [2], [0, 0, 0, 1, 1, 2], [0], [0]>} : vector<2x8x8xf32>, vector<2x8x32xf32>, vector<2x8x32xf32> -> vector<2x8x32xf32>
    "tpu.trace_stop"() : () -> ()
    %c0_13 = arith.constant 0 : index
    %c0_14 = arith.constant 0 : index
    %c0_15 = arith.constant 0 : index
    %24 = vector.load %arg5[%c0_13, %c0_14, %c0_15] : memref<2x8x32xf32, #tpu.memory_space<vmem>>, vector<2x8x32xf32>
    tpu.vector_store %arg5[%c0_13, %c0_14, %c0_15], %23 {strides = array<i32>} : memref<2x8x32xf32, #tpu.memory_space<vmem>>, vector<2x8x32xf32>,
    %c0_16 = arith.constant 0 : index
    %c0_17 = arith.constant 0 : index
    %c0_18 = arith.constant 0 : index
    %25 = vector.load %arg6[%c0_16, %c0_17, %c0_18] : memref<2x8x8xf32, #tpu.memory_space<vmem>>, vector<2x8x8xf32>
    tpu.vector_store %arg6[%c0_16, %c0_17, %c0_18], %19 {strides = array<i32>} : memref<2x8x8xf32, #tpu.memory_space<vmem>>, vector<2x8x8xf32>,
    %c0_19 = arith.constant 0 : index
    %c0_20 = arith.constant 0 : index
    %c0_21 = arith.constant 0 : index
    %26 = vector.load %arg7[%c0_19, %c0_20, %c0_21] : memref<2x8x8xf32, #tpu.memory_space<vmem>>, vector<2x8x8xf32>
    tpu.vector_store %arg7[%c0_19, %c0_20, %c0_21], %22 {strides = array<i32>} : memref<2x8x8xf32, #tpu.memory_space<vmem>>, vector<2x8x8xf32>,
    return
  }
  func.func @transform_0(%arg0: i32, %arg1: i32) -> (i32, i32, i32) {
    %c0_i32 = arith.constant 0 : i32
    %c0_i32_0 = arith.constant 0 : i32
    return %arg0, %arg1, %c0_i32 : i32, i32, i32
  }
  func.func @transform_1(%arg0: i32, %arg1: i32) -> (i32, i32, i32) {
    %c0_i32 = arith.constant 0 : i32
    %c0_i32_0 = arith.constant 0 : i32
    %c0_i32_1 = arith.constant 0 : i32
    return %arg0, %c0_i32, %c0_i32_0 : i32, i32, i32
  }
  func.func @transform_2(%arg0: i32, %arg1: i32) -> (i32, i32, i32) {
    %c0_i32 = arith.constant 0 : i32
    %c0_i32_0 = arith.constant 0 : i32
    %c0_i32_1 = arith.constant 0 : i32
    return %arg0, %c0_i32, %c0_i32_0 : i32, i32, i32
  }
  func.func @transform_3(%arg0: i32, %arg1: i32) -> (i32, i32, i32) {
    %c0_i32 = arith.constant 0 : i32
    %c0_i32_0 = arith.constant 0 : i32
    return %arg0, %arg1, %c0_i32 : i32, i32, i32
  }
  func.func @transform_4(%arg0: i32, %arg1: i32) -> (i32, i32, i32) {
    %c0_i32 = arith.constant 0 : i32
    %c0_i32_0 = arith.constant 0 : i32
    return %arg0, %arg1, %c0_i32 : i32, i32, i32
  }
  func.func @transform_5(%arg0: i32, %arg1: i32) -> (i32, i32, i32) {
    %c0_i32 = arith.constant 0 : i32
    %c0_i32_0 = arith.constant 0 : i32
    return %arg0, %arg1, %c0_i32 : i32, i32, i32
  }
}

</mosaic_0001>

<bundles_post_ra>
// kernel: tpu_custom_call.1
= control target key start
LH: loop header
LB: loop body
LE: loop exit
PB: predicated region body
PF: predicated region fallthrough
CT: control target
= control target key end

     0   :  { %11 = vsyncpa [#allocation3], 0  ;;  %s810_s0 = inlined_call_operand.hbm [shape: f32[2,8,32], index: 0, kind: input, shape index: {}]   ;;  %s811_s1 = inlined_call_operand.hbm [shape: f32[2,8,32], index: 1, kind: input, shape index: {}]   ;;  %s812_s2 = inlined_call_operand.hbm [shape: f32[2,8,32], index: 2, kind: input, shape index: {}]   ;;  %s813_s3 = inlined_call_operand.hbm [shape: f32[2,8,32], index: 3, kind: output, shape index: {0}]   ;;  %s814_s4 = inlined_call_operand.hbm [shape: f32[2,8,8], index: 4, kind: output, shape index: {1}]   ;;  %s815_s5 = inlined_call_operand.hbm [shape: f32[2,8,8], index: 5, kind: output, shape index: {2}]  }
   0x1   :  { %12 = vsyncpa [#allocation6], 0 }
   0x2   :  { %13 = vsyncpa [#allocation4], 0 }
   0x3   :  { %14 = vsyncpa [#allocation10], 0  ;;  %s653_s18 = smov [#allocation5]   ;;  %s654_s20 = smov [#allocation2]  }
   0x4   :  { %s32_s19 = sshll.u32 %s653_s18, 4  ;;  %s20_s21 = sshll.u32 %s654_s20, 4  ;;  %s33_s19 = int_to_ptr.vmem [resolvable:$true] %s32_s19  ;;  %s693_s21 = int_to_ptr.vmem [resolvable:$true] %s20_s21 }
   0x5   :  { %s513_s24 = scalar_lea.hbm %s811_s1, 256 }
   0x6   :  { %p514_p0 = scmp.ne.s32.totalorder %s811_s1, %s513_s24  ;;  %p517_p1 = scmp.lt.u32.totalorder %s513_s24, %s811_s1 }
   0x8   :  { %p519_p2 = pnand %p517_p1, %p514_p0 }
   0xa   :  { %522 = shalt.err (!%p519_p2)
}
   0xb   :  { %s523_s29 = scalar_lea.vmem %s33_s19, 256  ;;  %p528_p4 = scmp.lt.s32.totalorder %s33_s19, %s33_s19 }
   0xc   :  { %p524_p3 = scmp.ne.s32.totalorder %s33_s19, %s523_s29  ;;  %p529_p5 = scmp.lt.s32.totalorder %s523_s29, %s523_s29 }
   0xe   :  { %p530_p6 = por %p529_p5, %p528_p4 }
  0x10   :  { %p531_p7 = pnand %p530_p6, %p524_p3 }
  0x12   :  { %534 = shalt.err (!%p531_p7)
}
  0x13   :  { %s655_s30 = smov 128   ;;  %s656_s6 = smov 8  }
  0x14   :  { %38 = dma.hbm_to_vmem [thread:$0]  %s811_s1, 256, %s33_s19, [#allocation6], %s655_s30, %s655_s30, %s656_s6  }
  0x15   :  { %s535_s11 = scalar_lea.hbm %s810_s0, 256 }
  0x16   :  { %p536_p8 = scmp.ne.s32.totalorder %s810_s0, %s535_s11  ;;  %p539_p9 = scmp.lt.u32.totalorder %s535_s11, %s810_s0 }
  0x18   :  { %p541_p10 = pnand %p539_p9, %p536_p8 }
  0x1a   :  { %544 = shalt.err (!%p541_p10)
}
  0x1b   :  { %s545_s16 = scalar_lea.vmem %s693_s21, 256  ;;  %p550_p12 = scmp.lt.s32.totalorder %s693_s21, %s693_s21 }
  0x1c   :  { %p546_p11 = scmp.ne.s32.totalorder %s693_s21, %s545_s16  ;;  %p551_p13 = scmp.lt.s32.totalorder %s545_s16, %s545_s16 }
  0x1e   :  { %p552_p0 = por %p551_p13, %p550_p12 }
  0x20   :  { %p553_p1 = pnand %p552_p0, %p546_p11 }
  0x22   :  { %556 = shalt.err (!%p553_p1)
}
  0x23   :  { %26 = dma.hbm_to_vmem [thread:$0]  %s810_s0, 256, %s693_s21, [#allocation3], %s655_s30, %s655_s30, %s656_s6  }
  0x24   :  { %s657_s18 = smov [#allocation7]   ;;  %s557_s23 = scalar_lea.hbm %s812_s2, 256 }
  0x25   :  { %s44_s19 = sshll.u32 %s657_s18, 4  ;;  %p558_p2 = scmp.ne.s32.totalorder %s812_s2, %s557_s23  ;;  %s45_s19 = int_to_ptr.vmem [resolvable:$true] %s44_s19 }
  0x26   :  { %p561_p3 = scmp.lt.u32.totalorder %s557_s23, %s812_s2 }
  0x28   :  { %p563_p4 = pnand %p561_p3, %p558_p2 }
  0x2a   :  { %566 = shalt.err (!%p563_p4)
}
  0x2b   :  { %s567_s28 = scalar_lea.vmem %s45_s19, 256  ;;  %p572_p6 = scmp.lt.s32.totalorder %s45_s19, %s45_s19 }
  0x2c   :  { %p568_p5 = scmp.ne.s32.totalorder %s45_s19, %s567_s28  ;;  %p573_p7 = scmp.lt.s32.totalorder %s567_s28, %s567_s28 }
  0x2e   :  { %p574_p8 = por %p573_p7, %p572_p6 }
  0x30   :  { %p575_p9 = pnand %p574_p8, %p568_p5 }
  0x32   :  { %578 = shalt.err (!%p575_p9)
}
  0x33   :  { %50 = dma.hbm_to_vmem [thread:$0]  %s812_s2, 256, %s45_s19, [#allocation6], %s655_s30, %s655_s30, %s656_s6  }
  0x34   :  { %645 = dma.done.wait [#allocation3], 256  }
  0x35   :  { %646 = vsyncadd [#allocation3], 4294967040 }
  0x36   :  { %647 = dma.done.wait [#allocation6], 512  }
  0x37   :  { %648 = vsyncadd [#allocation6], 4294966784  ;;  %v658_v0 = vmov 0.0   ;;  %vm659_vm0 = vmmov 0   ;;  %vm68_vm1 = vcmask 261120   ;;  %v64_v1 = vld [vmem:[#allocation5] sm:$0xff] }
  0x38   :  { %471 = vmatprep.subr.mxu0 %v658_v0  ;;  %473 = vmatprep.mubr.msk.f32.mxu0 %vm659_vm0, %v658_v0  ;;  %v60_v2 = vld [vmem:[#allocation2] sm:$0xff]  ;;  %v65_v3 = vld [vmem:[#allocation5 + $0x8] sm:$0xff]  ;;  %v61_v5 = vld [vmem:[#allocation2 + $0x8] sm:$0xff]  ;;  %vm221_vm2 = vcmask 64512   ;;  %s660_s2 = smov [#allocation9]  }
  0x39   :  { %476 = vmatprep.subr.mxu1 %v658_v0  ;;  %478 = vmatprep.mubr.msk.f32.mxu1 %vm659_vm0, %v658_v0  ;;  %v62_v4 = vmul.f32 0.17677669, %v60_v2  ;;  %v63_v6 = vmul.f32 0.17677669, %v61_v5  ;;  %v66_v23 = vld [vmem:[#allocation7] sm:$0xff]  ;;  %v67_v24 = vld [vmem:[#allocation7 + $0x8] sm:$0xff] }
  0x3a   :  { %472 = vmatpush3.xpose.msk.msra.mxu0 %vm68_vm1, %v64_v1  ;;  %477 = vmatpush3.xpose.msk.msra.mxu1 %vm68_vm1, %v65_v3  ;;  %s425_s29 = sshll.u32 %s660_s2, 4  ;;  %s426_s29 = int_to_ptr.vmem [resolvable:$true] %s425_s29 }
  0x3b   :  { %481 = vmatprep.subr.mxu0 %v658_v0  ;;  %486 = vmatprep.subr.mxu1 %v658_v0  ;;  %s579_s7 = scalar_lea.vmem %s426_s29, 256  ;;  %p584_p11 = scmp.lt.s32.totalorder %s426_s29, %s426_s29 }
  0x3c   :  { %p580_p10 = scmp.ne.s32.totalorder %s426_s29, %s579_s7  ;;  %p585_p12 = scmp.lt.s32.totalorder %s579_s7, %s579_s7 }
  0x3d   :  { %474 = vmatmul.mubr.msk.f32.vlgmr.msra.gmra.mrb[0].mxu0 %vm68_vm1, %v62_v4  ;;  %479 = vmatmul.mubr.msk.f32.vlgmr.msra.gmra.mrb[0].mxu1 %vm68_vm1, %v63_v6 }
  0x3e   :  { %483 = vmatprep.mubr.msk.f32.mxu0 %vm659_vm0, %v658_v0  ;;  %488 = vmatprep.mubr.msk.f32.mxu1 %vm659_vm0, %v658_v0  ;;  %p586_p13 = por %p585_p12, %p584_p11 }
  0x3f   :  { %482 = vmatpush3.msra.mxu0 %v66_v23  ;;  %487 = vmatpush3.msra.mxu1 %v67_v24 }
  0x40   :  { %p587_p0 = pnand %p586_p13, %p580_p10 }
 0x110   :  { %v141_v7 = vpop.f32.mrb[0].mxu0  ;;  %v217_v8 = vpop.f32.mrb[0].mxu1 }
 0x111   :  { %v475_v9 = vpop.f32.mrb[1].mxu0  ;;  %v222_v10 = vsel %vm221_vm2, %v141_v7, -inf  ;;  %v480_v11 = vpop.f32.mrb[1].mxu1  ;;  %v225_v12 = vsel %vm221_vm2, %v217_v8, -inf }
 0x112   :  { %223 = vmax.xlane.f32.xlu0 %v222_v10 }
 0x116   :  { %226 = vmax.xlane.f32.xlu0 %v225_v12 }
 0x19f   :  { %v224_v13 = vpop.xlane.xlu0 %223 }
 0x1a0   :  { %v228_v14 = vsub.f32 %v141_v7, %v224_v13 }
 0x1a2   :  { %v230_v15 = vmul.f32 1.442695, %v228_v14 }
 0x1a3   :  { %v227_v16 = vpop.xlane.xlu0 %226 }
 0x1a4   :  { %501 = vpow2.f32 %v230_v15  ;;  %v229_v17 = vsub.f32 %v217_v8, %v227_v16 }
 0x1a6   :  { %v232_v18 = vmul.f32 1.442695, %v229_v17 }
 0x1a8   :  { %503 = vpow2.f32 %v232_v18 }
 0x1ae   :  { %v502_v19 = vpop.eup %501 }
 0x1af   :  { %v234_v20 = vsel %vm221_vm2, %v502_v19, 0.0 }
 0x1b0   :  { %235 = vadd.xlane.f32.xlu1 %v234_v20 }
 0x1b2   :  { %v504_v21 = vpop.eup %503 }
 0x1b3   :  { %v237_v22 = vsel %vm221_vm2, %v504_v21, 0.0 }
 0x1b4   :  { %238 = vadd.xlane.f32.xlu1 %v237_v22 }
 0x23d   :  { %v236_v25 = vpop.xlane.xlu1 %235 }
 0x23e   :  { %505 = vrcp.f32 %v236_v25 }
 0x23f   :  { %507 = vlog2.f32 %v236_v25 }
 0x241   :  { %v239_v26 = vpop.xlane.xlu1 %238 }
 0x242   :  { %509 = vrcp.f32 %v239_v26 }
 0x243   :  { %511 = vlog2.f32 %v239_v26 }
 0x248   :  { %v506_v27 = vpop.eup %505 }
 0x249   :  { %v508_v28 = vpop.eup %507  ;;  %v242_v29 = vmul.f32 %v506_v27, %v236_v25 }
 0x24a   :  { %v251_v30 = vmul.f32 0.6931472, %v508_v28 }
 0x24b   :  { %v244_v31 = vsub.f32 2.0, %v242_v29 }
 0x24c   :  { %v510_v32 = vpop.eup %509  ;;  %v254_v33 = vsub.f32 %v228_v14, %v251_v30 }
 0x24d   :  { %v512_v34 = vpop.eup %511  ;;  %v246_v35 = vmul.f32 %v506_v27, %v244_v31  ;;  %v243_v36 = vmul.f32 %v510_v32, %v239_v26 }
 0x24e   :  { %406 = vst.msk [vmem:[#allocation11] sm:$0xff] %vm221_vm2, %v254_v33  ;;  %v253_v37 = vmul.f32 0.6931472, %v512_v34 }
 0x24f   :  { %v248_v38 = vmul.f32 %v502_v19, %v246_v35  ;;  %v245_v39 = vsub.f32 2.0, %v243_v36 }
 0x250   :  { %v255_v40 = vsub.f32 %v229_v17, %v253_v37 }
 0x251   :  { %404 = vst.msk [vmem:[#allocation9] sm:$0xff] %vm221_vm2, %v248_v38  ;;  %v247_v41 = vmul.f32 %v510_v32, %v245_v39  ;;  %484 = vmatmul.mubr.msk.f32.vlgmr.msra.gmra.mrb[2].mxu0 %vm221_vm2, %v248_v38 }
 0x252   :  { %407 = vst.msk [vmem:[#allocation11 + $0x8] sm:$0xff] %vm221_vm2, %v255_v40 }
 0x253   :  { %v249_v42 = vmul.f32 %v504_v21, %v247_v41 }
 0x255   :  { %405 = vst.msk [vmem:[#allocation9 + $0x8] sm:$0xff] %vm221_vm2, %v249_v42  ;;  %489 = vmatmul.mubr.msk.f32.vlgmr.msra.gmra.mrb[2].mxu1 %vm221_vm2, %v249_v42 }
 0x256   :  { %590 = shalt.err (!%p587_p0)
}
 0x257   :  { %s591_s10 = scalar_lea.hbm %s814_s4, 256 }
 0x258   :  { %p592_p1 = scmp.ne.s32.totalorder %s814_s4, %s591_s10  ;;  %p595_p2 = scmp.lt.u32.totalorder %s591_s10, %s814_s4 }
 0x25a   :  { %p597_p3 = pnand %p595_p2, %p592_p1 }
 0x25c   :  { %600 = shalt.err (!%p597_p3)
}
 0x25d   :  { %431 = dma.vmem_to_hbm [thread:$0]  %s426_s29, 256, %s814_s4, [#allocation10], %s655_s30, %s655_s30, %s656_s6  }
 0x25e   :  { %s661_s1 = smov [#allocation11]  }
 0x25f   :  { %s437_s17 = sshll.u32 %s661_s1, 4  ;;  %s438_s17 = int_to_ptr.vmem [resolvable:$true] %s437_s17 }
 0x260   :  { %s601_s18 = scalar_lea.vmem %s438_s17, 256  ;;  %p606_p5 = scmp.lt.s32.totalorder %s438_s17, %s438_s17 }
 0x261   :  { %p602_p4 = scmp.ne.s32.totalorder %s438_s17, %s601_s18  ;;  %p607_p6 = scmp.lt.s32.totalorder %s601_s18, %s601_s18 }
 0x263   :  { %p608_p7 = por %p607_p6, %p606_p5 }
 0x265   :  { %p609_p8 = pnand %p608_p7, %p602_p4 }
 0x267   :  { %612 = shalt.err (!%p609_p8)
}
 0x268   :  { %s613_s22 = scalar_lea.hbm %s815_s5, 256 }
 0x269   :  { %p614_p9 = scmp.ne.s32.totalorder %s815_s5, %s613_s22  ;;  %p617_p10 = scmp.lt.u32.totalorder %s613_s22, %s815_s5 }
 0x26b   :  { %p619_p11 = pnand %p617_p10, %p614_p9 }
 0x26d   :  { %622 = shalt.err (!%p619_p11)
}
 0x26e   :  { %443 = dma.vmem_to_hbm [thread:$0]  %s438_s17, 256, %s815_s5, [#allocation10], %s655_s30, %s655_s30, %s656_s6  }
 0x26f   :  { %s662_s28 = smov [#allocation8]  }
 0x270   :  { %s413_s0 = sshll.u32 %s662_s28, 4  ;;  %s414_s0 = int_to_ptr.vmem [resolvable:$true] %s413_s0 }
 0x271   :  { %s623_s21 = scalar_lea.vmem %s414_s0, 256  ;;  %p628_p13 = scmp.lt.s32.totalorder %s414_s0, %s414_s0 }
 0x272   :  { %p624_p12 = scmp.ne.s32.totalorder %s414_s0, %s623_s21  ;;  %p629_p0 = scmp.lt.s32.totalorder %s623_s21, %s623_s21 }
 0x274   :  { %p630_p1 = por %p629_p0, %p628_p13 }
 0x276   :  { %p631_p2 = pnand %p630_p1, %p624_p12 }
 0x324   :  { %v325_v43 = vpop.f32.mrb[2].mxu0 }
 0x325   :  { %402 = vst.msk [vmem:[#allocation8] sm:$0xff] %vm68_vm1, %v325_v43  ;;  %v485_v44 = vpop.f32.mrb[3].mxu0 }
 0x328   :  { %v398_v45 = vpop.f32.mrb[2].mxu1 }
 0x329   :  { %403 = vst.msk [vmem:[#allocation8 + $0x8] sm:$0xff] %vm68_vm1, %v398_v45  ;;  %v490_v46 = vpop.f32.mrb[3].mxu1 }
 0x32a   :  { %634 = shalt.err (!%p631_p2)
}
 0x32b   :  { %s635_s29 = scalar_lea.hbm %s813_s3, 256 }
 0x32c   :  { %p636_p3 = scmp.ne.s32.totalorder %s813_s3, %s635_s29  ;;  %p639_p4 = scmp.lt.u32.totalorder %s635_s29, %s813_s3 }
 0x32e   :  { %p641_p5 = pnand %p639_p4, %p636_p3 }
 0x330   :  { %644 = shalt.err (!%p641_p5)
}
 0x331   :  { %419 = dma.vmem_to_hbm [thread:$0]  %s414_s0, 256, %s813_s3, [#allocation4], %s655_s30, %s655_s30, %s656_s6  }
 0x332   :  { %649 = dma.done.wait [#allocation4], 256  }
 0x333   :  { %650 = vsyncadd [#allocation4], 4294967040 }
 0x334   :  { %651 = dma.done.wait [#allocation10], 512  }
 0x335   :  { %652 = vsyncadd [#allocation10], 4294966784 }
 0x336   :  { %453 = vsyncpa [#allocation3], 1 }
 0x337   :  { %454 = vsyncpa [#allocation6], 1 }
 0x338   :  { %455 = vsyncpa [#allocation4], 1 }
 0x339   :  { %456 = vsyncpa [#allocation10], 1 }

</bundles_post_ra>
